<compile_context>
chip_gen: v7x
topology: tpu7x:2x2x1
jax: 0.10.0
libtpu: 0.0.40
codegen_flags: <defaults>
</compile_context>

<pallas_src>
import math

import jax
import jax.numpy as jnp
from jax import lax
from jax.experimental import pallas as pl
from jax.experimental.pallas import tpu as pltpu

HIDDEN_SIZE = 32
INPUT_SIZE = 25
N_LAYERS = 1
OUTPUT_SIZE = 1

_SUBLANE = 8                      # f32 sublane multiple
_MAX_CHUNK = 512                  # time steps resident per grid step
_UNROLL_FULL = 32                 # fully unroll the recurrence below this
_FORI_UNROLL = 16                 # unroll factor for the long-chunk fori path
_VMEM_LIMIT = 32 * 1024 * 1024    # scoped VMEM (>= v5e default, <= v7x phys)


def _make_kernel(tc, bp, pad_steps):
    """Build the per-chunk kernel with static chunk geometry baked in.

    tc        : time steps per chunk
    bp        : padded batch (sublane multiple)
    pad_steps : number of padded (invalid) steps at the end of the LAST chunk
    """
    n_always_valid = tc - pad_steps   # steps valid in every chunk

    def kernel(x_ref, h0_ref, wih_ref, whh_ref, b_ref, wfc_ref, bfc_ref,
               out_ref, hout_ref, h_carry, pre_ref, hst_ref):
        # x_ref   : (tc*bp, I)  input slab (time-major, batch padded)
        # h0_ref  : (bp, H)     initial hidden state
        # wih_ref : (I, H)      W_ih^T          whh_ref : (H, H) W_hh^T
        # b_ref   : (1, H)      b_ih + b_hh
        # wfc_ref : (H, O)      W_fc^T          bfc_ref : (1, O) b_fc
        # out_ref : (tc*bp, O)  fc(r_out) slab for this chunk
        # hout_ref: (bp, H)     final hidden state (written on last chunk only)
        # h_carry : (bp, H) f32 hidden state carried across chunks
        # pre_ref : (tc*bp, H) f32 scratch: x@Wih^T + b (read-only in the loop)
        # hst_ref : (tc*bp, H) f32 scratch: per-step hidden states (fc input)
        chunk = pl.program_id(0)
        last = pl.num_programs(0) - 1

        @pl.when(chunk == 0)
        def _():
            h_carry[...] = h0_ref[...].astype(jnp.float32)

        # (1) Input projection hoisted out of the recurrence: one matmul +
        #     one bias broadcast for the whole chunk.
        pre_ref[...] = (jnp.dot(x_ref[...], wih_ref[...],
                                preferred_element_type=jnp.float32)
                        + b_ref[...])

        # Hoisted loop invariant (never re-read inside the loop).
        whh = whh_ref[...]

        def step(row, h):
            # Critical path per step: one (bp,H)x(H,H) matmul + tanh.
            pre = pre_ref[pl.ds(row, bp), :]
            h_new = jnp.tanh(pre + jnp.dot(h, whh,
                                           preferred_element_type=jnp.float32))
            hst_ref[pl.ds(row, bp), :] = h_new      # off the dependent chain
            return h_new

        def run_steps(h, lo, hi):
            n = hi - lo
            if n <= 0:
                return h
            if n <= _UNROLL_FULL:
                for t in range(lo, hi):             # static, tile-aligned rows
                    h = step(t * bp, h)
                return h
            return lax.fori_loop(
                lo, hi,
                lambda t, hh: step(pl.multiple_of(t * bp, bp), hh),
                h, unroll=_FORI_UNROLL)

        # (2) Steps valid in every chunk — no masking anywhere on this path.
        h = run_steps(h_carry[...], 0, n_always_valid)
        h_carry[...] = h

        # (3) Tail steps exist only because T was padded to a multiple of tc;
        #     they are real steps for every chunk except the last one.
        if pad_steps > 0:
            @pl.when(chunk != last)
            def _():
                h_carry[...] = run_steps(h, n_always_valid, tc)

        # (4) fc head hoisted out of the recurrence: one matmul + one store.
        #     (Padded tail rows of hst_ref in the last chunk are discarded by
        #      the wrapper, so their stale contents are harmless.)
        out_ref[...] = (jnp.dot(hst_ref[...], wfc_ref[...],
                                preferred_element_type=jnp.float32)
                        + bfc_ref[...]).astype(out_ref.dtype)

        # (5) Final hidden state: only the last chunk's value matters.
        @pl.when(chunk == last)
        def _():
            hout_ref[...] = h_carry[...].astype(hout_ref.dtype)

    return kernel


def rnn_forward(x, hidden, params, max_chunk=_MAX_CHUNK):
    """Mirrors RNN.forward(x, hidden) -> (output, hidden)."""
    B, T, I = x.shape
    H = params["w_hh"].shape[0]
    O = params["w_fc"].shape[0]
    if hidden is None:
        hidden = jnp.zeros((N_LAYERS, B, H), dtype=x.dtype)

    Bp = ((B + _SUBLANE - 1) // _SUBLANE) * _SUBLANE
    Tc = min(T, max_chunk)
    n_chunks = -(-T // Tc)            # ceil
    Tp = n_chunks * Tc
    pad_t = Tp - T

    # Time-major, batch padded to the sublane multiple, time padded to a
    # multiple of Tc, flattened to a 2-D slab so each time step is one aligned
    # 8-row group (no in-kernel reshapes / masked lane stores on x).
    x_tbi = jnp.transpose(x, (1, 0, 2))                          # (T, B, I)
    x_tbi = jnp.pad(x_tbi, ((0, pad_t), (0, Bp - B), (0, 0)))    # (Tp, Bp, I)
    x2d = x_tbi.reshape(Tp * Bp, I)

    h0 = jnp.pad(hidden[0], ((0, Bp - B), (0, 0)))               # (Bp, H)
    wih_t = params["w_ih"].T                                     # (I, H)
    whh_t = params["w_hh"].T                                     # (H, H)
    b = (params["b_ih"] + params["b_hh"]).reshape(1, H)          # (1, H)
    wfc_t = params["w_fc"].T                                     # (H, O)
    bfc = params["b_fc"].reshape(1, O)                           # (1, O)

    kernel = _make_kernel(Tc, Bp, pad_t)

    out2d, h_final = pl.pallas_call(
        kernel,
        out_shape=(
            jax.ShapeDtypeStruct((Tp * Bp, O), x.dtype),
            jax.ShapeDtypeStruct((Bp, H), x.dtype),
        ),
        grid_spec=pltpu.PrefetchScalarGridSpec(
            num_scalar_prefetch=0,
            grid=(n_chunks,),
            in_specs=[
                pl.BlockSpec((Tc * Bp, I), lambda c: (c, 0)),    # x chunk
                pl.BlockSpec((Bp, H), lambda c: (0, 0)),         # h0
                pl.BlockSpec((I, H), lambda c: (0, 0)),          # W_ih^T
                pl.BlockSpec((H, H), lambda c: (0, 0)),          # W_hh^T
                pl.BlockSpec((1, H), lambda c: (0, 0)),          # b_ih + b_hh
                pl.BlockSpec((H, O), lambda c: (0, 0)),          # W_fc^T
                pl.BlockSpec((1, O), lambda c: (0, 0)),          # b_fc
            ],
            out_specs=(
                pl.BlockSpec((Tc * Bp, O), lambda c: (c, 0)),    # fc(r_out)
                pl.BlockSpec((Bp, H), lambda c: (0, 0)),         # final h
            ),
            scratch_shapes=[
                pltpu.VMEM((Bp, H), jnp.float32),        # h carried over chunks
                pltpu.VMEM((Tc * Bp, H), jnp.float32),   # pre-activations
                pltpu.VMEM((Tc * Bp, H), jnp.float32),   # hidden states
            ],
        ),
        compiler_params=pltpu.CompilerParams(
            dimension_semantics=("arbitrary",),
            vmem_limit_bytes=_VMEM_LIMIT),
    )(x2d, h0, wih_t, whh_t, b, wfc_t, bfc)

    output = jnp.transpose(out2d.reshape(Tp, Bp, O)[:T, :B, :], (1, 0, 2))
    hidden_out = h_final[:B][None]                               # (1, B, H)
    return output, hidden_out


def rnn_reference(x, hidden, params):
    """Pure-JAX reference matching torch.nn.RNN(tanh) + nn.Linear."""
    B, T, _ = x.shape
    H = params["w_hh"].shape[0]
    h = jnp.zeros((B, H), x.dtype) if hidden is None else hidden[0]
    hs = []
    for t in range(T):
        h = jnp.tanh(x[:, t] @ params["w_ih"].T + params["b_ih"]
                     + h @ params["w_hh"].T + params["b_hh"])
        hs.append(h)
    r_out = jnp.stack(hs, axis=1)                          # (B, T, H)
    out = r_out @ params["w_fc"].T + params["b_fc"]        # (B, T, O)
    return out, h[None]


def init_params(key, input_size, hidden_size, output_size):
    """Deterministic init matching torch.nn.RNN / nn.Linear shapes."""
    k = jax.random.split(key, 6)
    s_rnn = 1.0 / math.sqrt(hidden_size)
    s_fc = 1.0 / math.sqrt(hidden_size)
    return {
        "w_ih": jax.random.uniform(k[0], (hidden_size, input_size),
                                   jnp.float32, -s_rnn, s_rnn),
        "w_hh": jax.random.uniform(k[1], (hidden_size, hidden_size),
                                   jnp.float32, -s_rnn, s_rnn),
        "b_ih": jax.random.uniform(k[2], (hidden_size,),
                                   jnp.float32, -s_rnn, s_rnn),
        "b_hh": jax.random.uniform(k[3], (hidden_size,),
                                   jnp.float32, -s_rnn, s_rnn),
        "w_fc": jax.random.uniform(k[4], (output_size, hidden_size),
                                   jnp.float32, -s_fc, s_fc),
        "b_fc": jax.random.uniform(k[5], (output_size,),
                                   jnp.float32, -s_fc, s_fc),
    }


if __name__ == "__main__":
    key = jax.random.PRNGKey(0)
    k_x, k_x2, k_p = jax.random.split(key, 3)
    params = init_params(k_p, INPUT_SIZE, HIDDEN_SIZE, OUTPUT_SIZE)

    # Main check: module-sized small input (batch=2, seq=8).
    batch, seq = 2, 8
    x = jax.random.normal(k_x, (batch, seq, INPUT_SIZE), jnp.float32)
    output, hidden_out = rnn_forward(x, None, params)
    jax.block_until_ready((output, hidden_out))
    assert output.shape == (batch, seq, OUTPUT_SIZE)
    assert hidden_out.shape == (N_LAYERS, batch, HIDDEN_SIZE)
    ref_out, ref_h = rnn_reference(x, None, params)
    assert jnp.allclose(output, ref_out, rtol=2e-3, atol=2e-3)
    assert jnp.allclose(hidden_out, ref_h, rtol=2e-3, atol=2e-3)

    # Extra check: forces multi-chunk + padded-tail masking (Tc=3, T=8 -> pad 1).
    out_c, h_c = rnn_forward(x, None, params, max_chunk=3)
    jax.block_until_ready((out_c, h_c))
    assert jnp.allclose(out_c, ref_out, rtol=2e-3, atol=2e-3)
    assert jnp.allclose(h_c, ref_h, rtol=2e-3, atol=2e-3)

    # Extra check: exercises the fori_loop (long-chunk) path, still tiny.
    seq2 = 70
    x2 = jax.random.normal(k_x2, (batch, seq2, INPUT_SIZE), jnp.float32)
    out_l, h_l = rnn_forward(x2, None, params)
    jax.block_until_ready((out_l, h_l))
    ref_out2, ref_h2 = rnn_reference(x2, None, params)
    assert jnp.allclose(out_l, ref_out2, rtol=2e-3, atol=2e-3)
    assert jnp.allclose(h_l, ref_h2, rtol=2e-3, atol=2e-3)

    print("KERNEL_OK")
</pallas_src>

<mosaic_0001>
module attributes {stable_mosaic.version = 11 : i64} {
  func.func @kernel(%arg0: i32, %arg1: memref<64x25xf32, #tpu.memory_space<vmem>>, %arg2: memref<8x32xf32, #tpu.memory_space<vmem>>, %arg3: memref<25x32xf32, #tpu.memory_space<vmem>>, %arg4: memref<32x32xf32, #tpu.memory_space<vmem>>, %arg5: memref<1x32xf32, #tpu.memory_space<vmem>>, %arg6: memref<32x1xf32, #tpu.memory_space<vmem>>, %arg7: memref<1x1xf32, #tpu.memory_space<vmem>>, %arg8: memref<64x1xf32, #tpu.memory_space<vmem>>, %arg9: memref<8x32xf32, #tpu.memory_space<vmem>>, %arg10: memref<8x32xf32, #tpu.memory_space<vmem>>, %arg11: memref<64x32xf32, #tpu.memory_space<vmem>>, %arg12: memref<64x32xf32, #tpu.memory_space<vmem>>) attributes {dimension_semantics = [#tpu.dimension_semantics<arbitrary>], iteration_bounds = array<i64: 1>, scalar_prefetch = 0 : i64, scratch_operands = 3 : i64, tpu.core_type = #tpu.core_type<tc>, window_params = [{transform_indices = @transform_0, window_bounds = array<i64: 64, 25>}, {pipeline_mode = #tpu.pipeline_mode<synchronous>, transform_indices = @transform_1, window_bounds = array<i64: 8, 32>}, {pipeline_mode = #tpu.pipeline_mode<synchronous>, transform_indices = @transform_2, window_bounds = array<i64: 25, 32>}, {pipeline_mode = #tpu.pipeline_mode<synchronous>, transform_indices = @transform_3, window_bounds = array<i64: 32, 32>}, {pipeline_mode = #tpu.pipeline_mode<synchronous>, transform_indices = @transform_4, window_bounds = array<i64: 1, 32>}, {pipeline_mode = #tpu.pipeline_mode<synchronous>, transform_indices = @transform_5, window_bounds = array<i64: 32, 1>}, {pipeline_mode = #tpu.pipeline_mode<synchronous>, transform_indices = @transform_6, window_bounds = array<i64: 1, 1>}, {transform_indices = @transform_7, window_bounds = array<i64: 64, 1>}, {pipeline_mode = #tpu.pipeline_mode<synchronous>, transform_indices = @transform_8, window_bounds = array<i64: 8, 32>}]} {
    %c0_i32 = arith.constant 0 : i32
    %0 = arith.cmpi eq, %arg0, %c0_i32 : i32
    %1 = arith.extui %0 : i1 to i32
    %c0_i32_0 = arith.constant 0 : i32
    %2 = arith.cmpi ne, %1, %c0_i32_0 : i32
    scf.if %2 {
      %c0_58 = arith.constant 0 : index
      %c0_59 = arith.constant 0 : index
      %63 = vector.load %arg2[%c0_58, %c0_59] : memref<8x32xf32, #tpu.memory_space<vmem>>, vector<8x32xf32>
      %c0_60 = arith.constant 0 : index
      %c0_61 = arith.constant 0 : index
      %64 = vector.load %arg10[%c0_60, %c0_61] : memref<8x32xf32, #tpu.memory_space<vmem>>, vector<8x32xf32>
      tpu.vector_store %arg10[%c0_60, %c0_61], %63 {strides = array<i32>} : memref<8x32xf32, #tpu.memory_space<vmem>>, vector<8x32xf32>,
    } else {
    }
    %c0 = arith.constant 0 : index
    %c0_1 = arith.constant 0 : index
    %3 = vector.load %arg1[%c0, %c0_1] : memref<64x25xf32, #tpu.memory_space<vmem>>, vector<64x25xf32>
    %c0_2 = arith.constant 0 : index
    %c0_3 = arith.constant 0 : index
    %4 = vector.load %arg3[%c0_2, %c0_3] : memref<25x32xf32, #tpu.memory_space<vmem>>, vector<25x32xf32>
    %cst = arith.constant dense<0.000000e+00> : vector<64x32xf32>
    %5 = tpu.matmul %3, %4, %cst {dimension_numbers = #tpu.dot_dimension_numbers<[1], [0], [0], [1], [0, 0, 1, 1], [], []>} : vector<64x25xf32>, vector<25x32xf32>, vector<64x32xf32> -> vector<64x32xf32>
    %c0_4 = arith.constant 0 : index
    %c0_5 = arith.constant 0 : index
    %6 = vector.load %arg5[%c0_4, %c0_5] : memref<1x32xf32, #tpu.memory_space<vmem>>, vector<1x32xf32>
    %7 = vector.broadcast %6 : vector<1x32xf32> to vector<64x32xf32>
    %8 = arith.addf %5, %7 : vector<64x32xf32>
    %c0_6 = arith.constant 0 : index
    %c0_7 = arith.constant 0 : index
    %9 = vector.load %arg11[%c0_6, %c0_7] : memref<64x32xf32, #tpu.memory_space<vmem>>, vector<64x32xf32>
    tpu.vector_store %arg11[%c0_6, %c0_7], %8 {strides = array<i32>} : memref<64x32xf32, #tpu.memory_space<vmem>>, vector<64x32xf32>,
    %c0_8 = arith.constant 0 : index
    %c0_9 = arith.constant 0 : index
    %10 = vector.load %arg4[%c0_8, %c0_9] : memref<32x32xf32, #tpu.memory_space<vmem>>, vector<32x32xf32>
    %c0_10 = arith.constant 0 : index
    %c0_11 = arith.constant 0 : index
    %11 = vector.load %arg10[%c0_10, %c0_11] : memref<8x32xf32, #tpu.memory_space<vmem>>, vector<8x32xf32>
    %c0_12 = arith.constant 0 : index
    %c0_13 = arith.constant 0 : index
    %12 = vector.load %arg11[%c0_12, %c0_13] : memref<64x32xf32, #tpu.memory_space<vmem>>, vector<8x32xf32>
    %cst_14 = arith.constant dense<0.000000e+00> : vector<8x32xf32>
    %13 = tpu.matmul %11, %10, %cst_14 {dimension_numbers = #tpu.dot_dimension_numbers<[1], [0], [0], [1], [0, 0, 1, 1], [], []>} : vector<8x32xf32>, vector<32x32xf32>, vector<8x32xf32> -> vector<8x32xf32>
    %14 = arith.addf %12, %13 : vector<8x32xf32>
    %15 = math.tanh %14 : vector<8x32xf32>
    %c0_15 = arith.constant 0 : index
    %c0_16 = arith.constant 0 : index
    %16 = vector.load %arg12[%c0_15, %c0_16] : memref<64x32xf32, #tpu.memory_space<vmem>>, vector<8x32xf32>
    tpu.vector_store %arg12[%c0_15, %c0_16], %15 {strides = array<i32>} : memref<64x32xf32, #tpu.memory_space<vmem>>, vector<8x32xf32>,
    %c8 = arith.constant 8 : index
    %c0_17 = arith.constant 0 : index
    %17 = vector.load %arg11[%c8, %c0_17] : memref<64x32xf32, #tpu.memory_space<vmem>>, vector<8x32xf32>
    %cst_18 = arith.constant dense<0.000000e+00> : vector<8x32xf32>
    %18 = tpu.matmul %15, %10, %cst_18 {dimension_numbers = #tpu.dot_dimension_numbers<[1], [0], [0], [1], [0, 0, 1, 1], [], []>} : vector<8x32xf32>, vector<32x32xf32>, vector<8x32xf32> -> vector<8x32xf32>
    %19 = arith.addf %17, %18 : vector<8x32xf32>
    %20 = math.tanh %19 : vector<8x32xf32>
    %c8_19 = arith.constant 8 : index
    %c0_20 = arith.constant 0 : index
    %21 = vector.load %arg12[%c8_19, %c0_20] : memref<64x32xf32, #tpu.memory_space<vmem>>, vector<8x32xf32>
    tpu.vector_store %arg12[%c8_19, %c0_20], %20 {strides = array<i32>} : memref<64x32xf32, #tpu.memory_space<vmem>>, vector<8x32xf32>,
    %c16 = arith.constant 16 : index
    %c0_21 = arith.constant 0 : index
    %22 = vector.load %arg11[%c16, %c0_21] : memref<64x32xf32, #tpu.memory_space<vmem>>, vector<8x32xf32>
    %cst_22 = arith.constant dense<0.000000e+00> : vector<8x32xf32>
    %23 = tpu.matmul %20, %10, %cst_22 {dimension_numbers = #tpu.dot_dimension_numbers<[1], [0], [0], [1], [0, 0, 1, 1], [], []>} : vector<8x32xf32>, vector<32x32xf32>, vector<8x32xf32> -> vector<8x32xf32>
    %24 = arith.addf %22, %23 : vector<8x32xf32>
    %25 = math.tanh %24 : vector<8x32xf32>
    %c16_23 = arith.constant 16 : index
    %c0_24 = arith.constant 0 : index
    %26 = vector.load %arg12[%c16_23, %c0_24] : memref<64x32xf32, #tpu.memory_space<vmem>>, vector<8x32xf32>
    tpu.vector_store %arg12[%c16_23, %c0_24], %25 {strides = array<i32>} : memref<64x32xf32, #tpu.memory_space<vmem>>, vector<8x32xf32>,
    %c24 = arith.constant 24 : index
    %c0_25 = arith.constant 0 : index
    %27 = vector.load %arg11[%c24, %c0_25] : memref<64x32xf32, #tpu.memory_space<vmem>>, vector<8x32xf32>
    %cst_26 = arith.constant dense<0.000000e+00> : vector<8x32xf32>
    %28 = tpu.matmul %25, %10, %cst_26 {dimension_numbers = #tpu.dot_dimension_numbers<[1], [0], [0], [1], [0, 0, 1, 1], [], []>} : vector<8x32xf32>, vector<32x32xf32>, vector<8x32xf32> -> vector<8x32xf32>
    %29 = arith.addf %27, %28 : vector<8x32xf32>
    %30 = math.tanh %29 : vector<8x32xf32>
    %c24_27 = arith.constant 24 : index
    %c0_28 = arith.constant 0 : index
    %31 = vector.load %arg12[%c24_27, %c0_28] : memref<64x32xf32, #tpu.memory_space<vmem>>, vector<8x32xf32>
    tpu.vector_store %arg12[%c24_27, %c0_28], %30 {strides = array<i32>} : memref<64x32xf32, #tpu.memory_space<vmem>>, vector<8x32xf32>,
    %c32 = arith.constant 32 : index
    %c0_29 = arith.constant 0 : index
    %32 = vector.load %arg11[%c32, %c0_29] : memref<64x32xf32, #tpu.memory_space<vmem>>, vector<8x32xf32>
    %cst_30 = arith.constant dense<0.000000e+00> : vector<8x32xf32>
    %33 = tpu.matmul %30, %10, %cst_30 {dimension_numbers = #tpu.dot_dimension_numbers<[1], [0], [0], [1], [0, 0, 1, 1], [], []>} : vector<8x32xf32>, vector<32x32xf32>, vector<8x32xf32> -> vector<8x32xf32>
    %34 = arith.addf %32, %33 : vector<8x32xf32>
    %35 = math.tanh %34 : vector<8x32xf32>
    %c32_31 = arith.constant 32 : index
    %c0_32 = arith.constant 0 : index
    %36 = vector.load %arg12[%c32_31, %c0_32] : memref<64x32xf32, #tpu.memory_space<vmem>>, vector<8x32xf32>
    tpu.vector_store %arg12[%c32_31, %c0_32], %35 {strides = array<i32>} : memref<64x32xf32, #tpu.memory_space<vmem>>, vector<8x32xf32>,
    %c40 = arith.constant 40 : index
    %c0_33 = arith.constant 0 : index
    %37 = vector.load %arg11[%c40, %c0_33] : memref<64x32xf32, #tpu.memory_space<vmem>>, vector<8x32xf32>
    %cst_34 = arith.constant dense<0.000000e+00> : vector<8x32xf32>
    %38 = tpu.matmul %35, %10, %cst_34 {dimension_numbers = #tpu.dot_dimension_numbers<[1], [0], [0], [1], [0, 0, 1, 1], [], []>} : vector<8x32xf32>, vector<32x32xf32>, vector<8x32xf32> -> vector<8x32xf32>
    %39 = arith.addf %37, %38 : vector<8x32xf32>
    %40 = math.tanh %39 : vector<8x32xf32>
    %c40_35 = arith.constant 40 : index
    %c0_36 = arith.constant 0 : index
    %41 = vector.load %arg12[%c40_35, %c0_36] : memref<64x32xf32, #tpu.memory_space<vmem>>, vector<8x32xf32>
    tpu.vector_store %arg12[%c40_35, %c0_36], %40 {strides = array<i32>} : memref<64x32xf32, #tpu.memory_space<vmem>>, vector<8x32xf32>,
    %c48 = arith.constant 48 : index
    %c0_37 = arith.constant 0 : index
    %42 = vector.load %arg11[%c48, %c0_37] : memref<64x32xf32, #tpu.memory_space<vmem>>, vector<8x32xf32>
    %cst_38 = arith.constant dense<0.000000e+00> : vector<8x32xf32>
    %43 = tpu.matmul %40, %10, %cst_38 {dimension_numbers = #tpu.dot_dimension_numbers<[1], [0], [0], [1], [0, 0, 1, 1], [], []>} : vector<8x32xf32>, vector<32x32xf32>, vector<8x32xf32> -> vector<8x32xf32>
    %44 = arith.addf %42, %43 : vector<8x32xf32>
    %45 = math.tanh %44 : vector<8x32xf32>
    %c48_39 = arith.constant 48 : index
    %c0_40 = arith.constant 0 : index
    %46 = vector.load %arg12[%c48_39, %c0_40] : memref<64x32xf32, #tpu.memory_space<vmem>>, vector<8x32xf32>
    tpu.vector_store %arg12[%c48_39, %c0_40], %45 {strides = array<i32>} : memref<64x32xf32, #tpu.memory_space<vmem>>, vector<8x32xf32>,
    %c56 = arith.constant 56 : index
    %c0_41 = arith.constant 0 : index
    %47 = vector.load %arg11[%c56, %c0_41] : memref<64x32xf32, #tpu.memory_space<vmem>>, vector<8x32xf32>
    %cst_42 = arith.constant dense<0.000000e+00> : vector<8x32xf32>
    %48 = tpu.matmul %45, %10, %cst_42 {dimension_numbers = #tpu.dot_dimension_numbers<[1], [0], [0], [1], [0, 0, 1, 1], [], []>} : vector<8x32xf32>, vector<32x32xf32>, vector<8x32xf32> -> vector<8x32xf32>
    %49 = arith.addf %47, %48 : vector<8x32xf32>
    %50 = math.tanh %49 : vector<8x32xf32>
    %c56_43 = arith.constant 56 : index
    %c0_44 = arith.constant 0 : index
    %51 = vector.load %arg12[%c56_43, %c0_44] : memref<64x32xf32, #tpu.memory_space<vmem>>, vector<8x32xf32>
    tpu.vector_store %arg12[%c56_43, %c0_44], %50 {strides = array<i32>} : memref<64x32xf32, #tpu.memory_space<vmem>>, vector<8x32xf32>,
    %c0_45 = arith.constant 0 : index
    %c0_46 = arith.constant 0 : index
    %52 = vector.load %arg10[%c0_45, %c0_46] : memref<8x32xf32, #tpu.memory_space<vmem>>, vector<8x32xf32>
    tpu.vector_store %arg10[%c0_45, %c0_46], %50 {strides = array<i32>} : memref<8x32xf32, #tpu.memory_space<vmem>>, vector<8x32xf32>,
    %c0_47 = arith.constant 0 : index
    %c0_48 = arith.constant 0 : index
    %53 = vector.load %arg12[%c0_47, %c0_48] : memref<64x32xf32, #tpu.memory_space<vmem>>, vector<64x32xf32>
    %c0_49 = arith.constant 0 : index
    %c0_50 = arith.constant 0 : index
    %54 = vector.load %arg6[%c0_49, %c0_50] : memref<32x1xf32, #tpu.memory_space<vmem>>, vector<32x1xf32>
    %cst_51 = arith.constant dense<0.000000e+00> : vector<64x1xf32>
    %55 = tpu.matmul %53, %54, %cst_51 {dimension_numbers = #tpu.dot_dimension_numbers<[1], [0], [0], [1], [0, 0, 1, 1], [], []>} : vector<64x32xf32>, vector<32x1xf32>, vector<64x1xf32> -> vector<64x1xf32>
    %c0_52 = arith.constant 0 : index
    %c0_53 = arith.constant 0 : index
    %56 = vector.load %arg7[%c0_52, %c0_53] : memref<1x1xf32, #tpu.memory_space<vmem>>, vector<1x1xf32>
    %57 = vector.broadcast %56 : vector<1x1xf32> to vector<64x1xf32>
    %58 = arith.addf %55, %57 : vector<64x1xf32>
    %c0_54 = arith.constant 0 : index
    %c0_55 = arith.constant 0 : index
    %59 = vector.load %arg8[%c0_54, %c0_55] : memref<64x1xf32, #tpu.memory_space<vmem>>, vector<64x1xf32>
    tpu.vector_store %arg8[%c0_54, %c0_55], %58 {strides = array<i32>} : memref<64x1xf32, #tpu.memory_space<vmem>>, vector<64x1xf32>,
    %c0_i32_56 = arith.constant 0 : i32
    %60 = arith.cmpi eq, %arg0, %c0_i32_56 : i32
    %61 = arith.extui %60 : i1 to i32
    %c0_i32_57 = arith.constant 0 : i32
    %62 = arith.cmpi ne, %61, %c0_i32_57 : i32
    scf.if %62 {
      %c0_58 = arith.constant 0 : index
      %c0_59 = arith.constant 0 : index
      %63 = vector.load %arg10[%c0_58, %c0_59] : memref<8x32xf32, #tpu.memory_space<vmem>>, vector<8x32xf32>
      %c0_60 = arith.constant 0 : index
      %c0_61 = arith.constant 0 : index
      %64 = vector.load %arg9[%c0_60, %c0_61] : memref<8x32xf32, #tpu.memory_space<vmem>>, vector<8x32xf32>
      tpu.vector_store %arg9[%c0_60, %c0_61], %63 {strides = array<i32>} : memref<8x32xf32, #tpu.memory_space<vmem>>, vector<8x32xf32>,
    } else {
    }
    return
  }
  func.func @transform_0(%arg0: i32) -> (i32, i32) {
    %c0_i32 = arith.constant 0 : i32
    %c0_i32_0 = arith.constant 0 : i32
    return %arg0, %c0_i32 : i32, i32
  }
  func.func @transform_1(%arg0: i32) -> (i32, i32) {
    %c0_i32 = arith.constant 0 : i32
    %c0_i32_0 = arith.constant 0 : i32
    %c0_i32_1 = arith.constant 0 : i32
    return %c0_i32, %c0_i32_0 : i32, i32
  }
  func.func @transform_2(%arg0: i32) -> (i32, i32) {
    %c0_i32 = arith.constant 0 : i32
    %c0_i32_0 = arith.constant 0 : i32
    %c0_i32_1 = arith.constant 0 : i32
    return %c0_i32, %c0_i32_0 : i32, i32
  }
  func.func @transform_3(%arg0: i32) -> (i32, i32) {
    %c0_i32 = arith.constant 0 : i32
    %c0_i32_0 = arith.constant 0 : i32
    %c0_i32_1 = arith.constant 0 : i32
    return %c0_i32, %c0_i32_0 : i32, i32
  }
  func.func @transform_4(%arg0: i32) -> (i32, i32) {
    %c0_i32 = arith.constant 0 : i32
    %c0_i32_0 = arith.constant 0 : i32
    %c0_i32_1 = arith.constant 0 : i32
    return %c0_i32, %c0_i32_0 : i32, i32
  }
  func.func @transform_5(%arg0: i32) -> (i32, i32) {
    %c0_i32 = arith.constant 0 : i32
    %c0_i32_0 = arith.constant 0 : i32
    %c0_i32_1 = arith.constant 0 : i32
    return %c0_i32, %c0_i32_0 : i32, i32
  }
  func.func @transform_6(%arg0: i32) -> (i32, i32) {
    %c0_i32 = arith.constant 0 : i32
    %c0_i32_0 = arith.constant 0 : i32
    %c0_i32_1 = arith.constant 0 : i32
    return %c0_i32, %c0_i32_0 : i32, i32
  }
  func.func @transform_7(%arg0: i32) -> (i32, i32) {
    %c0_i32 = arith.constant 0 : i32
    %c0_i32_0 = arith.constant 0 : i32
    return %arg0, %c0_i32 : i32, i32
  }
  func.func @transform_8(%arg0: i32) -> (i32, i32) {
    %c0_i32 = arith.constant 0 : i32
    %c0_i32_0 = arith.constant 0 : i32
    %c0_i32_1 = arith.constant 0 : i32
    return %c0_i32, %c0_i32_0 : i32, i32
  }
}

</mosaic_0001>

<bundles_post_ra>
// kernel: tpu_custom_call.1
= control target key start
LH: loop header
LB: loop body
LE: loop exit
PB: predicated region body
PF: predicated region fallthrough
CT: control target
= control target key end

     0   :  { %s1606_s0 = inlined_call_operand.vmem [shape: f32[64,25], index: 0, kind: input, shape index: {}]   ;;  %s1607_s1 = inlined_call_operand.vmem [shape: f32[8,32], index: 1, kind: input, shape index: {}]   ;;  %s1608_s2 = inlined_call_operand.vmem [shape: f32[25,32], index: 2, kind: input, shape index: {}]   ;;  %s1609_s3 = inlined_call_operand.vmem [shape: f32[32,32], index: 3, kind: input, shape index: {}]   ;;  %s1610_s4 = inlined_call_operand.vmem [shape: f32[1,32], index: 4, kind: input, shape index: {}]   ;;  %s1611_s5 = inlined_call_operand.vmem [shape: f32[32,1], index: 5, kind: input, shape index: {}]   ;;  %s1612_s6 = inlined_call_operand.<no memory space> [shape: f32[1,1], index: 6, kind: input, shape index: {}]   ;;  %s1613_s7 = inlined_call_operand.vmem [shape: f32[64,1], index: 7, kind: output, shape index: {0}]   ;;  %s1614_s8 = inlined_call_operand.hbm [shape: f32[8,32], index: 8, kind: output, shape index: {1}]  }
   0x1   :  { %v14_v0 = vstv %s1612_s6 }
   0x2   :  { %15 = vst [vmem:[#allocation5] sm:$0x1] %v14_v0 }
   0x3   :  { %v46_v1 = vld [vmem:[%s1608_s2] sm:$0xff]  ;;  %v47_v2 = vld [vmem:[%s1608_s2 + $0x8] sm:$0xff]  ;;  %v48_v3 = vld [vmem:[%s1608_s2 + $0x10] sm:$0xff]  ;;  %vm82_vm0 = vcmask 1040384   ;;  %vm57_vm1 = vcmask 203776   ;;  %vm1336_vm2 = vmmov 1  }
   0x4   :  { %v1221_v4 = vpack.c.bf16 %v47_v2, %v46_v1  ;;  %v49_v5 = vld [vmem:[%s1608_s2 + $0x18] sm:$0x1]  ;;  %v38_v6 = vld [vmem:[%s1606_s0] sm:$0xff]  ;;  %vm1404_vm3 = vmpackc.low %vm82_vm0, %vm1336_vm2  ;;  %vm36_vm4 = vcmask 261120  }
   0x5   :  { %v1225_v7 = vpack.c.bf16 %v49_v5, %v48_v3  ;;  %1101 = vmatprep.mubr.msk.f32.mxu0 %vm57_vm1, %v38_v6  ;;  %v42_v9 = vld [vmem:[%s1606_s0 + $0x20] sm:$0xff]  ;;  %v201_v11 = vld [vmem:[%s1609_s3 + $0x8] sm:$0xff] }
   0x6   :  { %1222 = vmatprep.subr.bf16.mxu0 %v1221_v4  ;;  %1287 = vmatprep.subr.bf16.mxu1 %v1221_v4  ;;  %v200_v10 = vld [vmem:[%s1609_s3] sm:$0xff] }
   0x7   :  { %1224 = vmatpush3.bf16.msra.mxu0 %v1221_v4  ;;  %1289 = vmatpush3.bf16.msra.mxu1 %v1221_v4  ;;  %v35_v12 = vld [vmem:[%s1607_s1] sm:$0xff] }
   0x8   :  { %1227 = vmatprep.subr.msk.bf16.mxu0 %vm1404_vm3, %v1225_v7  ;;  %1288 = vmatprep.subr.msk.bf16.mxu1 %vm1404_vm3, %v1225_v7 }
   0x9   :  { %16 = vsyncpa [#allocation7], 0  ;;  %1107 = vmatprep.mubr.msk.f32.mxu1 %vm57_vm1, %v42_v9  ;;  %37 = vst.msk [vmem:[#allocation2] sm:$0xff] %vm36_vm4, %v35_v12  ;;  %v39_v13 = vld [vmem:[%s1606_s0 + $0x8] sm:$0xff]  ;;  %v1437_v15 = vpack.c.bf16 %v201_v11, %v200_v10  ;;  %v1337_v16 = vmov 0.0|0.0   ;;  %v44_v17 = vld [vmem:[%s1606_s0 + $0x30] sm:$0xff] }
   0xa   :  { %v43_v14 = vld [vmem:[%s1606_s0 + $0x28] sm:$0xff]  ;;  %v202_v18 = vld [vmem:[%s1609_s3 + $0x10] sm:$0xff]  ;;  %v203_v19 = vld [vmem:[%s1609_s3 + $0x18] sm:$0xff]  ;;  %vm1338_vm5 = vmmov 0   ;;  %v1339_v22 = vmov 0.0   ;;  %vm970_vm6 = vcmask 7168  }
   0xb   :  { %1230 = vmatpush3.bf16.msk.msra.mxu0 %vm1404_vm3, %v1225_v7  ;;  %1290 = vmatpush3.bf16.msk.msra.mxu1 %vm1404_vm3, %v1225_v7  ;;  %v45_v20 = vld [vmem:[%s1606_s0 + $0x38] sm:$0xff]  ;;  %v1457_v21 = vpack.c.bf16 %v203_v19, %v202_v18  ;;  %v1002_v24 = vld [vmem:[%s1610_s4] ss:$0 sm:$0xff]  ;;  %v40_v42 = vld [vmem:[%s1606_s0 + $0x10] sm:$0xff]  ;;  %s1340_s9 = smov [#allocation6]  }
   0xc   :  { %1231 = vmatprep.subr.bf16.mxu1 %v1337_v16  ;;  %1243 = vmatprep.subr.bf16.mxu0 %v1337_v16  ;;  %v41_v43 = vld [vmem:[%s1606_s0 + $0x18] sm:$0xff]  ;;  %v830_v4 = vld [vmem:[%s1611_s5] sm:$0xff]  ;;  %v831_v5 = vld [vmem:[%s1611_s5 + $0x8] sm:$0xff]  ;;  %s992_s10 = sshll.u32 %s1340_s9, 4  ;;  %s993_s10 = int_to_ptr.vmem [resolvable:$true] %s992_s10 }
   0xd   :  { %v1279_v6 = vpack.c.bf16 %v831_v5, %v830_v4  ;;  %v832_v11 = vld [vmem:[%s1611_s5 + $0x10] sm:$0xff]  ;;  %v833_v12 = vld [vmem:[%s1611_s5 + $0x18] sm:$0xff]  ;;  %s1312_s11 = scalar_lea.vmem %s993_s10, 128  ;;  %p1317_p1 = scmp.lt.s32.totalorder %s993_s10, %s993_s10 }
   0xe   :  { %1102 = vmatmul.mubr.msk.f32.vlgmr.msra.gmra.mrb[0].mxu0 %vm57_vm1, %v39_v13  ;;  %1108 = vmatmul.mubr.msk.f32.vlgmr.msra.gmra.mrb[0].mxu1 %vm57_vm1, %v43_v14  ;;  %v1283_v13 = vpack.c.bf16 %v833_v12, %v832_v11  ;;  %p1313_p0 = scmp.ne.s32.totalorder %s993_s10, %s1312_s11  ;;  %p1318_p2 = scmp.lt.s32.totalorder %s1312_s11, %s1312_s11 }
   0xf   :  { %1233 = vmatpush3.bf16.msra.mxu1 %v1437_v15  ;;  %1110 = vmatprep.mubr.msk.f32.mxu1 %vm57_vm1, %v44_v17 }
  0x10   :  { %1234 = vmatprep.subr.bf16.mxu1 %v1337_v16  ;;  %1245 = vmatpush3.bf16.msra.mxu0 %v1437_v15  ;;  %v204_v23 = vld [vmem:[#allocation2] sm:$0xff]  ;;  %p1319_p3 = por %p1318_p2, %p1317_p1 }
  0x11   :  { %1246 = vmatprep.subr.bf16.mxu0 %v1337_v16  ;;  %1104 = vmatprep.mubr.msk.f32.mxu0 %vm57_vm1, %v40_v42 }
  0x12   :  { %1111 = vmatmul.mubr.msk.f32.gmra.mrb[2].mxu1 %vm57_vm1, %v45_v20  ;;  %1105 = vmatmul.mubr.msk.f32.gmra.mrb[2].mxu0 %vm57_vm1, %v41_v43  ;;  %p1320_p4 = pnand %p1319_p3, %p1313_p0 }
  0x13   :  { %1236 = vmatpush3.bf16.msra.mxu1 %v1457_v21  ;;  %1121 = vmatprep.mubr.msk.f32.mxu1 %vm1338_vm5, %v1339_v22 }
  0x14   :  { %1237 = vmatprep.subr.bf16.mxu1 %v1337_v16  ;;  %1248 = vmatpush3.bf16.msra.mxu0 %v1457_v21 }
  0x15   :  { %1255 = vmatprep.subr.bf16.mxu0 %v1337_v16  ;;  %1143 = vmatprep.mubr.msk.f32.mxu0 %vm1338_vm5, %v1339_v22 }
  0x16   :  { %1122 = vmatmul.mubr.msk.f32.vlgmr.msra.gmra.mrb[4].mxu1 %vm36_vm4, %v204_v23 }
  0x17   :  { %1239 = vmatpush3.bf16.msra.mxu1 %v1437_v15  ;;  %1132 = vmatprep.mubr.msk.f32.mxu1 %vm1338_vm5, %v1339_v22 }
  0x18   :  { %1240 = vmatprep.subr.bf16.mxu1 %v1337_v16 }
  0x1b   :  { %1242 = vmatpush3.bf16.msra.mxu1 %v1457_v21 }
  0x1c   :  { %1249 = vmatprep.subr.bf16.mxu1 %v1337_v16 }
  0xe1   :  { %v1103_v25 = vpop.f32.mrb[0].mxu0  ;;  %v1109_v26 = vpop.f32.mrb[0].mxu1 }
  0xe2   :  { %v158_v27 = vadd.f32 %v1103_v25, %v1002_v24  ;;  %v152_v28 = vpop.f32.mrb[1].mxu0  ;;  %v178_v29 = vadd.f32 %v1109_v26, %v1002_v24  ;;  %v172_v30 = vpop.f32.mrb[1].mxu1  ;;  %v1020_v25 = vld [vmem:[#allocation5] ss:$0 sm:$0xff] }
  0xe3   :  { %v153_v31 = vadd.f32 %v1002_v24, %v152_v28  ;;  %v173_v32 = vadd.f32 %v1002_v24, %v172_v30 }
  0xe4   :  { %193 = vst.msk [vmem:[#allocation3 + $0x8] sm:$0xff] %vm36_vm4, %v158_v27  ;;  %197 = vst.msk [vmem:[#allocation3 + $0x28] sm:$0xff] %vm36_vm4, %v178_v29 }
  0xe5   :  { %192 = vst.msk [vmem:[#allocation3] sm:$0xff] %vm36_vm4, %v153_v31  ;;  %196 = vst.msk [vmem:[#allocation3 + $0x20] sm:$0xff] %vm36_vm4, %v173_v32  ;;  %v1112_v33 = vpop.f32.mrb[2].mxu1  ;;  %v1106_v49 = vpop.f32.mrb[2].mxu0 }
  0xe6   :  { %v188_v34 = vadd.f32 %v1112_v33, %v1002_v24  ;;  %v182_v35 = vpop.f32.mrb[3].mxu1  ;;  %v168_v50 = vadd.f32 %v1106_v49, %v1002_v24  ;;  %v162_v51 = vpop.f32.mrb[3].mxu0 }
  0xe7   :  { %v183_v36 = vadd.f32 %v1002_v24, %v182_v35  ;;  %v163_v52 = vadd.f32 %v1002_v24, %v162_v51 }
  0xe8   :  { %199 = vst.msk [vmem:[#allocation3 + $0x38] sm:$0xff] %vm36_vm4, %v188_v34  ;;  %195 = vst.msk [vmem:[#allocation3 + $0x18] sm:$0xff] %vm36_vm4, %v168_v50 }
  0xe9   :  { %198 = vst.msk [vmem:[#allocation3 + $0x30] sm:$0xff] %vm36_vm4, %v183_v36  ;;  %v275_v37 = vpop.f32.mrb[4].mxu1  ;;  %194 = vst.msk [vmem:[#allocation3 + $0x10] sm:$0xff] %vm36_vm4, %v163_v52 }
  0xea   :  { %v1123_v38 = vpop.f32.mrb[5].mxu1 }
  0xeb   :  { %v282_v44 = vld [vmem:[#allocation3 + $0x8] sm:$0xff] }
  0xec   :  { %v205_v39 = vld [vmem:[#allocation3] sm:$0xff]  ;;  %v590_v7 = vld [vmem:[#allocation3 + $0x28] sm:$0xff] }
  0xed   :  { %v279_v40 = vadd.f32 %v275_v37, %v205_v39  ;;  %v513_v63 = vld [vmem:[#allocation3 + $0x20] sm:$0xff] }
  0xef   :  { %1296 = vtanh.f32 %v279_v40  ;;  %v436_v58 = vld [vmem:[#allocation3 + $0x18] sm:$0xff] }
  0xf0   :  { %v359_v53 = vld [vmem:[#allocation3 + $0x10] sm:$0xff]  ;;  %v744_v40 = vld [vmem:[#allocation3 + $0x38] sm:$0xff] }
  0xf9   :  { %v1297_v41 = vpop.eup %1296 }
  0xfa   :  { %281 = vst.msk [vmem:[#allocation4] sm:$0xff] %vm36_vm4, %v1297_v41  ;;  %1133 = vmatmul.mubr.msk.f32.vlgmr.msra.gmra.mrb[6].mxu1 %vm36_vm4, %v1297_v41 }
  0xfb   :  { %1251 = vmatpush3.bf16.msra.mxu1 %v1437_v15  ;;  %1154 = vmatprep.mubr.msk.f32.mxu1 %vm1338_vm5, %v1339_v22 }
  0xfc   :  { %1252 = vmatprep.subr.bf16.mxu1 %v1337_v16 }
  0xff   :  { %1254 = vmatpush3.bf16.msra.mxu1 %v1457_v21 }
 0x100   :  { %1261 = vmatprep.subr.bf16.mxu1 %v1337_v16 }
 0x1cd   :  { %v352_v45 = vpop.f32.mrb[6].mxu1 }
 0x1ce   :  { %v356_v46 = vadd.f32 %v352_v45, %v282_v44  ;;  %v1134_v47 = vpop.f32.mrb[7].mxu1 }
 0x1d0   :  { %1298 = vtanh.f32 %v356_v46 }
 0x1da   :  { %v1299_v48 = vpop.eup %1298 }
 0x1db   :  { %358 = vst.msk [vmem:[#allocation4 + $0x8] sm:$0xff] %vm36_vm4, %v1299_v48  ;;  %1144 = vmatmul.mubr.msk.f32.vlgmr.msra.gmra.mrb[4].mxu0 %vm36_vm4, %v1299_v48 }
 0x1dc   :  { %1257 = vmatpush3.bf16.msra.mxu0 %v1437_v15  ;;  %1165 = vmatprep.mubr.msk.f32.mxu0 %vm1338_vm5, %v1339_v22 }
 0x1dd   :  { %1258 = vmatprep.subr.bf16.mxu0 %v1337_v16 }
 0x1e0   :  { %1260 = vmatpush3.bf16.msra.mxu0 %v1457_v21 }
 0x1e1   :  { %1267 = vmatprep.subr.bf16.mxu0 %v1337_v16 }
 0x2ae   :  { %v429_v54 = vpop.f32.mrb[4].mxu0 }
 0x2af   :  { %v433_v55 = vadd.f32 %v429_v54, %v359_v53  ;;  %v1145_v56 = vpop.f32.mrb[5].mxu0 }
 0x2b1   :  { %1300 = vtanh.f32 %v433_v55 }
 0x2bb   :  { %v1301_v57 = vpop.eup %1300 }
 0x2bc   :  { %435 = vst.msk [vmem:[#allocation4 + $0x10] sm:$0xff] %vm36_vm4, %v1301_v57  ;;  %1155 = vmatmul.mubr.msk.f32.vlgmr.msra.gmra.mrb[8].mxu1 %vm36_vm4, %v1301_v57 }
 0x2bd   :  { %1263 = vmatpush3.bf16.msra.mxu1 %v1437_v15  ;;  %1176 = vmatprep.mubr.msk.f32.mxu1 %vm1338_vm5, %v1339_v22 }
 0x2be   :  { %1264 = vmatprep.subr.bf16.mxu1 %v1337_v16 }
 0x2c1   :  { %1266 = vmatpush3.bf16.msra.mxu1 %v1457_v21 }
 0x2c2   :  { %1273 = vmatprep.subr.bf16.mxu1 %v1337_v16 }
 0x2c3   :  { %v824_v17 = vld [vmem:[#allocation4 + $0x10] sm:$0xff] }
 0x38f   :  { %v506_v59 = vpop.f32.mrb[8].mxu1 }
 0x390   :  { %v510_v60 = vadd.f32 %v506_v59, %v436_v58  ;;  %v1156_v61 = vpop.f32.mrb[9].mxu1 }
 0x392   :  { %1302 = vtanh.f32 %v510_v60 }
 0x39c   :  { %v1303_v62 = vpop.eup %1302 }
 0x39d   :  { %512 = vst.msk [vmem:[#allocation4 + $0x18] sm:$0xff] %vm36_vm4, %v1303_v62  ;;  %1166 = vmatmul.mubr.msk.f32.vlgmr.msra.gmra.mrb[6].mxu0 %vm36_vm4, %v1303_v62 }
 0x39e   :  { %1269 = vmatpush3.bf16.msra.mxu0 %v1437_v15  ;;  %1187 = vmatprep.mubr.msk.f32.mxu0 %vm1338_vm5, %v1339_v22 }
 0x39f   :  { %1270 = vmatprep.subr.bf16.mxu0 %v1337_v16 }
 0x3a2   :  { %1272 = vmatpush3.bf16.msra.mxu0 %v1457_v21 }
 0x3a3   :  { %1280 = vmatprep.subr.bf16.mxu0 %v1279_v6 }
 0x3a4   :  { %v825_v18 = vld [vmem:[#allocation4 + $0x18] sm:$0xff] }
 0x470   :  { %v583_v0 = vpop.f32.mrb[6].mxu0 }
 0x471   :  { %v587_v1 = vadd.f32 %v583_v0, %v513_v63  ;;  %v1167_v2 = vpop.f32.mrb[7].mxu0 }
 0x473   :  { %1304 = vtanh.f32 %v587_v1 }
 0x47d   :  { %v1305_v3 = vpop.eup %1304 }
 0x47e   :  { %589 = vst.msk [vmem:[#allocation4 + $0x20] sm:$0xff] %vm36_vm4, %v1305_v3  ;;  %1177 = vmatmul.mubr.msk.f32.vlgmr.msra.gmra.mrb[10].mxu1 %vm36_vm4, %v1305_v3 }
 0x47f   :  { %1275 = vmatpush3.bf16.msra.mxu1 %v1437_v15  ;;  %1198 = vmatprep.mubr.msk.f32.mxu1 %vm1338_vm5, %v1339_v22  ;;  %v822_v15 = vld [vmem:[#allocation4] sm:$0xff] }
 0x480   :  { %1276 = vmatprep.subr.bf16.mxu1 %v1337_v16  ;;  %v823_v16 = vld [vmem:[#allocation4 + $0x8] sm:$0xff] }
 0x483   :  { %1278 = vmatpush3.bf16.msra.mxu1 %v1457_v21  ;;  %v667_v21 = vld [vmem:[#allocation3 + $0x30] sm:$0xff] }
 0x485   :  { %v826_v19 = vld [vmem:[#allocation4 + $0x20] sm:$0xff] }
 0x551   :  { %v660_v8 = vpop.f32.mrb[10].mxu1 }
 0x552   :  { %v664_v9 = vadd.f32 %v660_v8, %v590_v7  ;;  %v1178_v10 = vpop.f32.mrb[11].mxu1 }
 0x554   :  { %1306 = vtanh.f32 %v664_v9 }
 0x55e   :  { %v1307_v14 = vpop.eup %1306 }
 0x55f   :  { %666 = vst.msk [vmem:[#allocation4 + $0x28] sm:$0xff] %vm36_vm4, %v1307_v14  ;;  %1188 = vmatmul.mubr.msk.f32.vlgmr.msra.gmra.mrb[8].mxu0 %vm36_vm4, %v1307_v14 }
 0x560   :  { %1282 = vmatpush3.bf16.msra.mxu0 %v1279_v6  ;;  %1209 = vmatprep.mubr.msk.f32.mxu0 %vm36_vm4, %v822_v15 }
 0x561   :  { %1284 = vmatprep.subr.bf16.mxu0 %v1283_v13 }
 0x564   :  { %1286 = vmatpush3.bf16.msra.mxu0 %v1283_v13 }
 0x566   :  { %v827_v20 = vld [vmem:[#allocation4 + $0x28] sm:$0xff] }
 0x567   :  { %1210 = vmatmul.mubr.msk.f32.vlgmr.msra.gmra.mrb[10].mxu0 %vm36_vm4, %v823_v16 }
 0x568   :  { %1212 = vmatprep.mubr.msk.f32.mxu0 %vm36_vm4, %v824_v17 }
 0x56b   :  { %1213 = vmatmul.mubr.msk.f32.gmra.mrb[12].mxu0 %vm36_vm4, %v825_v18 }
 0x56c   :  { %1215 = vmatprep.mubr.msk.f32.mxu0 %vm36_vm4, %v826_v19 }
 0x56f   :  { %1216 = vmatmul.mubr.msk.f32.gmra.mrb[14].mxu0 %vm36_vm4, %v827_v20 }
 0x632   :  { %v737_v22 = vpop.f32.mrb[8].mxu0 }
 0x633   :  { %v741_v23 = vadd.f32 %v737_v22, %v667_v21  ;;  %v1189_v24 = vpop.f32.mrb[9].mxu0 }
 0x635   :  { %1308 = vtanh.f32 %v741_v23 }
 0x63a   :  { %v1211_v26 = vpop.f32.mrb[10].mxu0 }
 0x63b   :  { %v937_v27 = vadd.f32 %v1211_v26, %v1020_v25  ;;  %v931_v28 = vpop.f32.mrb[11].mxu0 }
 0x63c   :  { %v932_v29 = vadd.f32 %v1020_v25, %v931_v28 }
 0x63d   :  { %972 = vst.msk [vmem:[%s1613_s7 + $0x8] sm:$0xff] %vm970_vm6, %v937_v27 }
 0x63e   :  { %971 = vst.msk [vmem:[%s1613_s7] sm:$0xff] %vm970_vm6, %v932_v29  ;;  %v1214_v30 = vpop.f32.mrb[12].mxu0 }
 0x63f   :  { %v1309_v31 = vpop.eup %1308  ;;  %v947_v32 = vadd.f32 %v1214_v30, %v1020_v25  ;;  %v941_v33 = vpop.f32.mrb[13].mxu0 }
 0x640   :  { %743 = vst.msk [vmem:[#allocation4 + $0x30] sm:$0xff] %vm36_vm4, %v1309_v31  ;;  %v942_v34 = vadd.f32 %v1020_v25, %v941_v33  ;;  %1199 = vmatmul.mubr.msk.f32.vlgmr.msra.gmra.mrb[12].mxu1 %vm36_vm4, %v1309_v31 }
 0x641   :  { %974 = vst.msk [vmem:[%s1613_s7 + $0x18] sm:$0xff] %vm970_vm6, %v947_v32 }
 0x642   :  { %973 = vst.msk [vmem:[%s1613_s7 + $0x10] sm:$0xff] %vm970_vm6, %v942_v34  ;;  %v1217_v35 = vpop.f32.mrb[14].mxu0 }
 0x643   :  { %v957_v36 = vadd.f32 %v1217_v35, %v1020_v25  ;;  %v951_v37 = vpop.f32.mrb[15].mxu0 }
 0x644   :  { %v952_v38 = vadd.f32 %v1020_v25, %v951_v37 }
 0x645   :  { %976 = vst.msk [vmem:[%s1613_s7 + $0x28] sm:$0xff] %vm970_vm6, %v957_v36 }
 0x646   :  { %975 = vst.msk [vmem:[%s1613_s7 + $0x20] sm:$0xff] %vm970_vm6, %v952_v38 }
 0x647   :  { %v828_v39 = vld [vmem:[#allocation4 + $0x30] sm:$0xff] }
 0x648   :  { %1218 = vmatprep.mubr.msk.f32.mxu0 %vm36_vm4, %v828_v39 }
 0x713   :  { %v814_v41 = vpop.f32.mrb[12].mxu1 }
 0x714   :  { %v818_v42 = vadd.f32 %v814_v41, %v744_v40  ;;  %v1200_v43 = vpop.f32.mrb[13].mxu1 }
 0x716   :  { %1310 = vtanh.f32 %v818_v42 }
 0x720   :  { %v1311_v44 = vpop.eup %1310 }
 0x721   :  { %820 = vst.msk [vmem:[#allocation4 + $0x38] sm:$0xff] %vm36_vm4, %v1311_v44  ;;  %821 = vst.msk [vmem:[#allocation2] sm:$0xff] %vm36_vm4, %v1311_v44 }
 0x728   :  { %v829_v45 = vld [vmem:[#allocation4 + $0x38] sm:$0xff] }
 0x729   :  { %v982_v46 = vld [vmem:[#allocation2] sm:$0xff]  ;;  %1219 = vmatmul.mubr.msk.f32.gmra.mrb[16].mxu0 %vm36_vm4, %v829_v45 }
 0x72a   :  { %983 = vst.msk [vmem:[#allocation6] sm:$0xff] %vm36_vm4, %v982_v46 }
 0x72b   :  { %1323 = shalt.err (!%p1320_p4)
}
 0x72c   :  { %s1324_s4 = scalar_lea.hbm %s1614_s8, 128 }
 0x72d   :  { %p1325_p5 = scmp.ne.s32.totalorder %s1614_s8, %s1324_s4  ;;  %p1328_p6 = scmp.lt.u32.totalorder %s1324_s4, %s1614_s8 }
 0x72f   :  { %p1330_p7 = pnand %p1328_p6, %p1325_p5 }
 0x731   :  { %1333 = shalt.err (!%p1330_p7)
}
 0x732   :  { %995 = dma.vmem_to_hbm [thread:$0]  %s993_s10, 128, %s1614_s8, [#allocation7]  }
 0x7fc   :  { %v1220_v47 = vpop.f32.mrb[16].mxu0 }
 0x7fd   :  { %v967_v48 = vadd.f32 %v1220_v47, %v1020_v25  ;;  %v961_v49 = vpop.f32.mrb[17].mxu0 }
 0x7fe   :  { %v962_v50 = vadd.f32 %v1020_v25, %v961_v49 }
 0x7ff   :  { %978 = vst.msk [vmem:[%s1613_s7 + $0x38] sm:$0xff] %vm970_vm6, %v967_v48 }
 0x800   :  { %977 = vst.msk [vmem:[%s1613_s7 + $0x30] sm:$0xff] %vm970_vm6, %v962_v50 }
 0x801   :  { %1334 = dma.done.wait [#allocation7], 128  }
 0x802   :  { %1335 = vsyncadd [#allocation7], 4294967168 }
 0x803   :  { %1001 = vsyncpa [#allocation7], 1 }

</bundles_post_ra>
